<compile_context>
chip_gen: v7x
topology: tpu7x:2x2x1
jax: 0.10.0
libtpu: 0.0.40
codegen_flags: <defaults>
</compile_context>

<pallas_src>
import jax
import jax.numpy as jnp
from jax import lax
from jax.experimental import pallas as pl
from jax.experimental.pallas import tpu as pltpu

SCALE_FACTOR = 7   # nn.Upsample(scale_factor=7), nearest
POOL_K = 32        # nn.AvgPool2d(kernel_size=32)


# ---------------------------------------------------------------------------
# Offline weight folding (plain-JAX glue, executed once per weight set).
# ---------------------------------------------------------------------------
def build_resample_matrix(H):
    """M such that (upsample x7 nearest -> avgpool 32) == M @ img @ M.T."""
    up = H * SCALE_FACTOR
    assert up % POOL_K == 0, "separable pooling matrix only exact when H*7 % 32 == 0"
    P = up // POOL_K
    up_idx = jnp.arange(up) // SCALE_FACTOR                    # nearest upsample
    onehot = jax.nn.one_hot(up_idx, H, dtype=jnp.float32)      # (H*7, H)
    M = onehot.reshape(P, POOL_K, H).sum(axis=1) / POOL_K      # (P, H)
    return M, P


def fold_pool_into_weight(w_img, C, H, W):
    """(C*P*P, D) image-projection weight -> (C*H*W, D) effective weight."""
    M, P = build_resample_matrix(H)
    D = w_img.shape[-1]
    w_r = w_img.reshape(C, P, P, D).astype(jnp.float32)
    w_eff = jnp.einsum('ph,qw,cpqd->chwd', M, M, w_r)          # (C, H, W, D)
    return w_eff.reshape(C * H * W, D)


# ---------------------------------------------------------------------------
# Single fused kernel: encoders (synthetic proj) + normalize + logits + loss
# ---------------------------------------------------------------------------
def clip_loss_kernel(img_ref, wimg_ref, txt_ref, wtxt_ref, scale_ref, out_ref):
    # img_ref:  (N, C*H*W) bf16    wimg_ref: (C*H*W, D) bf16
    # txt_ref:  (Nt, T)    bf16    wtxt_ref: (T, D)     bf16
    # scale_ref:(1, 1) SMEM f32    out_ref:  (N, Nt)    f32
    img_emb = jnp.dot(img_ref[...], wimg_ref[...],
                      preferred_element_type=jnp.float32)      # (N, D)  f32 acc
    txt_emb = jnp.dot(txt_ref[...], wtxt_ref[...],
                      preferred_element_type=jnp.float32)      # (Nt, D) f32 acc

    # L2 normalize via rsqrt (single EUP op; avoids sqrt + divide).
    img_f = img_emb * lax.rsqrt(
        jnp.sum(img_emb * img_emb, axis=-1, keepdims=True))
    txt_f = txt_emb * lax.rsqrt(
        jnp.sum(txt_emb * txt_emb, axis=-1, keepdims=True))

    # logits = exp(logit_scale) * img_f @ txt_f.T — contract last dims directly
    # (no explicit transpose / XLU materialization).
    logit_scale = jnp.exp(scale_ref[0, 0])
    logits = logit_scale * lax.dot_general(
        img_f, txt_f, dimension_numbers=(((1,), (1,)), ((), ())),
        preferred_element_type=jnp.float32)                    # (N, Nt)

    out_ref[...] = 1.0 - logits / 100.0


def clip_loss_forward(img, txt, w_img, w_txt, logit_scale_param):
    """Mirrors CLIPLoss.forward(img, txt) -> similarity (N_img, N_txt)."""
    N, C, H, W = img.shape
    Nt = txt.shape[0]

    # Fold upsample+avgpool into the image projection weight (exact).
    w_eff = fold_pool_into_weight(w_img, C, H, W)              # (C*H*W, D)

    # bf16 MXU operands; accumulation stays f32 inside the kernel.
    img_flat = img.reshape(N, C * H * W).astype(jnp.bfloat16)
    w_eff_b = w_eff.astype(jnp.bfloat16)
    txt_b = txt.astype(jnp.bfloat16)
    w_txt_b = w_txt.astype(jnp.bfloat16)
    scale_arr = jnp.asarray(logit_scale_param, jnp.float32).reshape(1, 1)

    vmem = pl.BlockSpec(memory_space=pltpu.MemorySpace.VMEM)
    smem = pl.BlockSpec(memory_space=pltpu.MemorySpace.SMEM)

    # All operands are tiny (< 1 MiB total) so whole-array VMEM residency is
    # safe on every generation (incl. v7x's 64 MiB VMEM); no grid needed.
    # TODO(synk): at real CLIP batch sizes, tile over (N, Nt) with ~(128,128)
    # blocks and mark those axes "parallel" for v7x's two TensorCores.
    sim = pl.pallas_call(
        clip_loss_kernel,
        out_shape=jax.ShapeDtypeStruct((N, Nt), jnp.float32),
        in_specs=[vmem, vmem, vmem, vmem, smem],
        out_specs=vmem,
    )(img_flat, w_eff_b, txt_b, w_txt_b, scale_arr)
    return sim


# ---------------------------------------------------------------------------
# Pure-JAX f32 reference (same synthetic parameters) for a sanity check.
# ---------------------------------------------------------------------------
def reference_forward(img, txt, w_img, w_txt, logit_scale_param):
    N, C, H, W = img.shape
    P = (H * SCALE_FACTOR) // POOL_K
    up = jnp.repeat(jnp.repeat(img, SCALE_FACTOR, axis=2), SCALE_FACTOR, axis=3)
    pooled = up.reshape(N, C, P, POOL_K, P, POOL_K).mean(axis=(3, 5))
    img_emb = pooled.reshape(N, -1) @ w_img
    txt_emb = txt @ w_txt
    img_f = img_emb / jnp.linalg.norm(img_emb, axis=-1, keepdims=True)
    txt_f = txt_emb / jnp.linalg.norm(txt_emb, axis=-1, keepdims=True)
    logits = jnp.exp(logit_scale_param) * (img_f @ txt_f.T)
    return 1.0 - logits / 100.0


if __name__ == "__main__":
    # Small shapes consistent with the forward pass:
    #   img: (N=2, C=3, H=W=32) -> upsample x7 -> 224 -> avgpool 32 -> 7x7
    #   txt: (Nt=2, T=128) synthetic text features; D=128 lane-aligned embedding
    N, C, H, W = 2, 3, 32, 32
    Nt, T_TXT, D_EMB = 2, 128, 128
    P = (H * SCALE_FACTOR) // POOL_K  # 7

    key = jax.random.PRNGKey(0)
    k_img, k_txt, k_wi, k_wt = jax.random.split(key, 4)
    img = jax.random.normal(k_img, (N, C, H, W), dtype=jnp.float32)
    txt = jax.random.normal(k_txt, (Nt, T_TXT), dtype=jnp.float32)

    # Deterministic synthetic "encoder" weights (stand-ins for ViT-B/32 / M-BERT).
    w_img = jax.random.normal(k_wi, (C * P * P, D_EMB), dtype=jnp.float32) * 0.05
    w_txt = jax.random.normal(k_wt, (T_TXT, D_EMB), dtype=jnp.float32) * 0.05

    # CLIP's logit_scale parameter is initialized to log(1/0.07); forward uses exp().
    logit_scale_param = float(jnp.log(1.0 / 0.07))

    forward = jax.jit(clip_loss_forward)
    sim = forward(img, txt, w_img, w_txt, logit_scale_param)
    sim = jax.block_until_ready(sim)

    ref = reference_forward(img, txt, w_img, w_txt, logit_scale_param)
    assert sim.shape == (N, Nt)
    # bf16 MXU operands (f32 accumulation) vs f32 reference -> loose tolerance.
    assert jnp.allclose(sim, ref, atol=2e-2, rtol=2e-2), (sim, ref)

    print("KERNEL_OK")
</pallas_src>

<mosaic_0001>
module attributes {stable_mosaic.version = 11 : i64} {
  func.func @clip_loss_kernel(%arg0: memref<2x3072xbf16, #tpu.memory_space<vmem>>, %arg1: memref<3072x128xbf16, #tpu.memory_space<vmem>>, %arg2: memref<2x128xbf16, #tpu.memory_space<vmem>>, %arg3: memref<128x128xbf16, #tpu.memory_space<vmem>>, %arg4: memref<1x1xf32, #tpu.memory_space<smem>>, %arg5: memref<2x2xf32, #tpu.memory_space<vmem>>) attributes {dimension_semantics = [], scalar_prefetch = 0 : i64, scratch_operands = 0 : i64, tpu.core_type = #tpu.core_type<tc>} {
    %c0 = arith.constant 0 : index
    %c0_0 = arith.constant 0 : index
    %0 = vector.load %arg0[%c0, %c0_0] : memref<2x3072xbf16, #tpu.memory_space<vmem>>, vector<2x3072xbf16>
    %c0_1 = arith.constant 0 : index
    %c0_2 = arith.constant 0 : index
    %1 = vector.load %arg1[%c0_1, %c0_2] : memref<3072x128xbf16, #tpu.memory_space<vmem>>, vector<3072x128xbf16>
    %cst = arith.constant dense<0.000000e+00> : vector<2x128xf32>
    %2 = tpu.matmul %0, %1, %cst {dimension_numbers = #tpu.dot_dimension_numbers<[1], [0], [0], [1], [0, 0, 1, 1], [], []>} : vector<2x3072xbf16>, vector<3072x128xbf16>, vector<2x128xf32> -> vector<2x128xf32>
    %c0_3 = arith.constant 0 : index
    %c0_4 = arith.constant 0 : index
    %3 = vector.load %arg2[%c0_3, %c0_4] : memref<2x128xbf16, #tpu.memory_space<vmem>>, vector<2x128xbf16>
    %c0_5 = arith.constant 0 : index
    %c0_6 = arith.constant 0 : index
    %4 = vector.load %arg3[%c0_5, %c0_6] : memref<128x128xbf16, #tpu.memory_space<vmem>>, vector<128x128xbf16>
    %cst_7 = arith.constant dense<0.000000e+00> : vector<2x128xf32>
    %5 = tpu.matmul %3, %4, %cst_7 {dimension_numbers = #tpu.dot_dimension_numbers<[1], [0], [0], [1], [0, 0, 1, 1], [], []>} : vector<2x128xbf16>, vector<128x128xbf16>, vector<2x128xf32> -> vector<2x128xf32>
    %6 = arith.mulf %2, %2 : vector<2x128xf32>
    %cst_8 = arith.constant dense<0.000000e+00> : vector<2xf32>
    %7 = vector.multi_reduction <add>, %6, %cst_8 [1] : vector<2x128xf32> to vector<2xf32>
    %8 = vector.shape_cast %7 : vector<2xf32> to vector<2x1xf32>
    %9 = math.rsqrt %8 : vector<2x1xf32>
    %10 = vector.broadcast %9 : vector<2x1xf32> to vector<2x128xf32>
    %11 = arith.mulf %2, %10 : vector<2x128xf32>
    %12 = arith.mulf %5, %5 : vector<2x128xf32>
    %cst_9 = arith.constant dense<0.000000e+00> : vector<2xf32>
    %13 = vector.multi_reduction <add>, %12, %cst_9 [1] : vector<2x128xf32> to vector<2xf32>
    %14 = vector.shape_cast %13 : vector<2xf32> to vector<2x1xf32>
    %15 = math.rsqrt %14 : vector<2x1xf32>
    %16 = vector.broadcast %15 : vector<2x1xf32> to vector<2x128xf32>
    %17 = arith.mulf %5, %16 : vector<2x128xf32>
    %c0_10 = arith.constant 0 : index
    %c0_11 = arith.constant 0 : index
    %18 = memref.load %arg4[%c0_10, %c0_11] : memref<1x1xf32, #tpu.memory_space<smem>>
    %19 = math.exp %18 : f32
    %cst_12 = arith.constant dense<0.000000e+00> : vector<2x2xf32>
    %20 = tpu.matmul %11, %17, %cst_12 {dimension_numbers = #tpu.dot_dimension_numbers<[1], [1], [0], [0], [0, 0, 1, 0], [], []>} : vector<2x128xf32>, vector<2x128xf32>, vector<2x2xf32> -> vector<2x2xf32>
    %21 = vector.broadcast %19 : f32 to vector<2x2xf32>
    %22 = arith.mulf %21, %20 : vector<2x2xf32>
    %cst_13 = arith.constant 1.000000e+02 : f32
    %23 = vector.broadcast %cst_13 : f32 to vector<2x2xf32>
    %24 = arith.divf %22, %23 : vector<2x2xf32>
    %cst_14 = arith.constant 1.000000e+00 : f32
    %25 = vector.broadcast %cst_14 : f32 to vector<2x2xf32>
    %26 = arith.subf %25, %24 : vector<2x2xf32>
    %c0_15 = arith.constant 0 : index
    %c0_16 = arith.constant 0 : index
    %27 = vector.load %arg5[%c0_15, %c0_16] : memref<2x2xf32, #tpu.memory_space<vmem>>, vector<2x2xf32>
    tpu.vector_store %arg5[%c0_15, %c0_16], %26 {strides = array<i32>} : memref<2x2xf32, #tpu.memory_space<vmem>>, vector<2x2xf32>,
    return
  }
}

</mosaic_0001>

<bundles_post_ra>
// kernel: clip_loss_forward.1
= control target key start
LH: loop header
LB: loop body
LE: loop exit
PB: predicated region body
PF: predicated region fallthrough
CT: control target
= control target key end

     0   :  { %v417_v29 = vlaneseq  ;;  %v3169_v35 = vmov 1966171168   ;;  %s3865_s0 = inlined_call_operand.vmem [shape: bf16[2,3072], index: 0, kind: input, shape index: {}]   ;;  %s3866_s1 = inlined_call_operand.vmem [shape: bf16[3072,128], index: 1, kind: input, shape index: {}]   ;;  %s3867_s2 = inlined_call_operand.vmem [shape: bf16[2,128], index: 2, kind: input, shape index: {}]   ;;  %s3868_s3 = inlined_call_operand.vmem [shape: bf16[128,128], index: 3, kind: input, shape index: {}]   ;;  %s3869_s4 = inlined_call_operand.<no memory space> [shape: f32[1,1], index: 4, kind: input, shape index: {}]   ;;  %s3870_s5 = inlined_call_operand.hbm [shape: f32[2,2], index: 5, kind: output, shape index: {}]  }
   0x1   :  { %v2936_v0 = vld [vmem:[%s3866_s1 + $0x40] sm:$0xff]   ;;  %v2940_v4 = vld [vmem:[%s3866_s1 + $0x48] sm:$0xff]   ;;  %v2944_v8 = vld [vmem:[%s3866_s1 + $0x50] sm:$0xff]   ;;  %v415_v36 = vunpack.c.l.s4 %v3169_v35 }
   0x2   :  { %v2937_v1 = vld [vmem:[%s3866_s1 + $0xc0] sm:$0xff]   ;;  %2630 = vmatprep.subr.bf16.mxu0 %v2936_v0  ;;  %v2941_v5 = vld [vmem:[%s3866_s1 + $0xc8] sm:$0xff]   ;;  %v2945_v9 = vld [vmem:[%s3866_s1 + $0xd0] sm:$0xff]   ;;  %v418_v33 = vshrl.u32 %v417_v29, 7 }
   0x3   :  { %v2938_v2 = vld [vmem:[%s3866_s1] sm:$0xff]   ;;  %2652 = vmatprep.subr.bf16.mxu1 %v2937_v1  ;;  %v2942_v6 = vld [vmem:[%s3866_s1 + $0x8] sm:$0xff]   ;;  %v2946_v10 = vld [vmem:[%s3866_s1 + $0x10] sm:$0xff]   ;;  %v416_v39 = vunpack.c.0.s8 %v415_v36 }
   0x4   :  { %v2939_v3 = vld [vmem:[%s3866_s1 + $0x80] sm:$0xff]   ;;  %2631 = vmatpush3.bf16.msra.mxu0 %v2938_v2  ;;  %v2943_v7 = vld [vmem:[%s3866_s1 + $0x88] sm:$0xff]   ;;  %v2947_v11 = vld [vmem:[%s3866_s1 + $0x90] sm:$0xff]  }
   0x5   :  { %2653 = vmatpush3.bf16.msra.mxu1 %v2939_v3  ;;  %2632 = vmatprep.subr.bf16.mxu0 %v2940_v4  ;;  %v2948_v12 = vld [vmem:[%s3866_s1 + $0x58] sm:$0xff]   ;;  %v2952_v16 = vld [vmem:[%s3866_s1 + $0x60] sm:$0xff]   ;;  %v2956_v20 = vld [vmem:[%s3866_s1 + $0x68] sm:$0xff]   ;;  %v3308_v41 = vsub.s32 %v416_v39, %v418_v33 }
   0x6   :  { %2654 = vmatprep.subr.bf16.mxu1 %v2941_v5  ;;  %v2949_v13 = vld [vmem:[%s3866_s1 + $0xd8] sm:$0xff]   ;;  %v2953_v17 = vld [vmem:[%s3866_s1 + $0xe0] sm:$0xff]   ;;  %v2957_v21 = vld [vmem:[%s3866_s1 + $0xe8] sm:$0xff]  }
   0x7   :  { %v2950_v14 = vld [vmem:[%s3866_s1 + $0x18] sm:$0xff]   ;;  %v2954_v18 = vld [vmem:[%s3866_s1 + $0x20] sm:$0xff]   ;;  %v2958_v22 = vld [vmem:[%s3866_s1 + $0x28] sm:$0xff]  }
   0x8   :  { %2633 = vmatpush3.bf16.msra.mxu0 %v2942_v6  ;;  %v2951_v15 = vld [vmem:[%s3866_s1 + $0x98] sm:$0xff]   ;;  %v2955_v19 = vld [vmem:[%s3866_s1 + $0xa0] sm:$0xff]   ;;  %v2959_v23 = vld [vmem:[%s3866_s1 + $0xa8] sm:$0xff]  }
   0x9   :  { %2655 = vmatpush3.bf16.msra.mxu1 %v2943_v7  ;;  %2634 = vmatprep.subr.bf16.mxu0 %v2944_v8  ;;  %v2960_v24 = vld [vmem:[%s3866_s1 + $0x70] sm:$0xff]   ;;  %v2964_v28 = vld [vmem:[%s3866_s1 + $0x78] sm:$0xff]   ;;  %v2969_v34 = vld [vmem:[%s3866_s1 + $0x140] sm:$0xff]  }
   0xa   :  { %2656 = vmatprep.subr.bf16.mxu1 %v2945_v9  ;;  %v2961_v25 = vld [vmem:[%s3866_s1 + $0xf0] sm:$0xff]   ;;  %v2965_v30 = vld [vmem:[%s3866_s1 + $0xf8] sm:$0xff]   ;;  %v23_v37 = vld [vmem:[%s3865_s0] sm:$0xff] }
   0xb   :  { %v2962_v26 = vld [vmem:[%s3866_s1 + $0x30] sm:$0xff]   ;;  %v2966_v31 = vld [vmem:[%s3866_s1 + $0x38] sm:$0xff]   ;;  %v413_v38 = vcombine.high %v23_v37, %v23_v37  ;;  %v2971_v40 = vld [vmem:[%s3866_s1 + $0x1c0] sm:$0xff]   ;;  %v420_v42 = vrot.slane %v23_v37, %v3308_v41 }
   0xc   :  { %2635 = vmatpush3.bf16.msra.mxu0 %v2946_v10  ;;  %v2963_v27 = vld [vmem:[%s3866_s1 + $0xb0] sm:$0xff]   ;;  %v2967_v32 = vld [vmem:[%s3866_s1 + $0xb8] sm:$0xff]   ;;  %v2970_v48 = vld [vmem:[%s3866_s1 + $0x100] sm:$0xff]  }
   0xd   :  { %2657 = vmatpush3.bf16.msra.mxu1 %v2947_v11  ;;  %2636 = vmatprep.subr.bf16.mxu0 %v2948_v12  ;;  %v3312_v43 = vrot.slane %v413_v38, %v3308_v41  ;;  %v428_v44 = vcombine.high %v420_v42, %v420_v42  ;;  %v436_v45 = vrot.slane %v420_v42, %v3308_v41  ;;  %v2973_v51 = vld [vmem:[%s3866_s1 + $0x148] sm:$0xff]   ;;  %v2972_v53 = vld [vmem:[%s3866_s1 + $0x180] sm:$0xff]   ;;  %v2977_v57 = vld [vmem:[%s3866_s1 + $0x150] sm:$0xff]  }
   0xe   :  { %2658 = vmatprep.subr.bf16.mxu1 %v2949_v13  ;;  %v2975_v54 = vld [vmem:[%s3866_s1 + $0x1c8] sm:$0xff]   ;;  %v2979_v59 = vld [vmem:[%s3866_s1 + $0x1d0] sm:$0xff]   ;;  %v2981_v61 = vld [vmem:[%s3866_s1 + $0x158] sm:$0xff]  }
   0xf   :  { %v429_v46 = vcombine.high %v3312_v43, %v3312_v43  ;;  %v450_v47 = vrot.slane %v428_v44, %v3308_v41  ;;  %v458_v50 = vcombine.high %v436_v45, %v436_v45  ;;  %v2974_v56 = vld [vmem:[%s3866_s1 + $0x108] sm:$0xff]   ;;  %v2978_v60 = vld [vmem:[%s3866_s1 + $0x110] sm:$0xff]   ;;  %v2983_v63 = vld [vmem:[%s3866_s1 + $0x1d8] sm:$0xff]  }
  0x10   :  { %2637 = vmatpush3.bf16.msra.mxu0 %v2950_v14  ;;  %v2976_v58 = vld [vmem:[%s3866_s1 + $0x188] sm:$0xff]   ;;  %v2980_v62 = vld [vmem:[%s3866_s1 + $0x190] sm:$0xff]   ;;  %v2982_v0 = vld [vmem:[%s3866_s1 + $0x118] sm:$0xff]  }
  0x11   :  { %2659 = vmatpush3.bf16.msra.mxu1 %v2951_v15  ;;  %2638 = vmatprep.subr.bf16.mxu0 %v2952_v16  ;;  %v457_v49 = vrot.slane %v429_v46, %v3308_v41  ;;  %v460_v52 = vcombine.high %v450_v47, %v450_v47  ;;  %v2985_v1 = vld [vmem:[%s3866_s1 + $0x160] sm:$0xff]   ;;  %v2984_v2 = vld [vmem:[%s3866_s1 + $0x198] sm:$0xff]   ;;  %v2989_v5 = vld [vmem:[%s3866_s1 + $0x168] sm:$0xff]  }
  0x12   :  { %2660 = vmatprep.subr.bf16.mxu1 %v2953_v17  ;;  %1768 = vmatprep.mubr.bf16.mxu0 %v450_v47  ;;  %v2987_v3 = vld [vmem:[%s3866_s1 + $0x1e0] sm:$0xff]   ;;  %v2991_v7 = vld [vmem:[%s3866_s1 + $0x1e8] sm:$0xff]   ;;  %v2993_v9 = vld [vmem:[%s3866_s1 + $0x170] sm:$0xff]   ;;  %v443_v17 = vrot.slane %v3312_v43, %v3308_v41 }
  0x13   :  { %v461_v55 = vcombine.high %v457_v49, %v457_v49  ;;  %1808 = vmatprep.mubr.bf16.mxu1 %v460_v52  ;;  %v2986_v4 = vld [vmem:[%s3866_s1 + $0x120] sm:$0xff]   ;;  %v2990_v8 = vld [vmem:[%s3866_s1 + $0x128] sm:$0xff]   ;;  %v2995_v11 = vld [vmem:[%s3866_s1 + $0x1f0] sm:$0xff]  }
  0x14   :  { %2639 = vmatpush3.bf16.msra.mxu0 %v2954_v18  ;;  %v2988_v6 = vld [vmem:[%s3866_s1 + $0x1a0] sm:$0xff]   ;;  %v2992_v10 = vld [vmem:[%s3866_s1 + $0x1a8] sm:$0xff]   ;;  %v2994_v12 = vld [vmem:[%s3866_s1 + $0x130] sm:$0xff]  }
  0x15   :  { %2661 = vmatpush3.bf16.msra.mxu1 %v2955_v19  ;;  %2640 = vmatprep.subr.bf16.mxu0 %v2956_v20  ;;  %v2997_v13 = vld [vmem:[%s3866_s1 + $0x178] sm:$0xff]   ;;  %v2996_v14 = vld [vmem:[%s3866_s1 + $0x1b0] sm:$0xff]   ;;  %v3001_v18 = vld [vmem:[%s3866_s1 + $0x240] sm:$0xff]  }
  0x16   :  { %2662 = vmatprep.subr.bf16.mxu1 %v2957_v21  ;;  %v2999_v15 = vld [vmem:[%s3866_s1 + $0x1f8] sm:$0xff]   ;;  %v3003_v20 = vld [vmem:[%s3866_s1 + $0x2c0] sm:$0xff]   ;;  %v3011_v29 = vld [vmem:[%s3866_s1 + $0x2d0] sm:$0xff]  }
  0x17   :  { %v2998_v16 = vld [vmem:[%s3866_s1 + $0x138] sm:$0xff]   ;;  %v3002_v21 = vld [vmem:[%s3866_s1 + $0x200] sm:$0xff]   ;;  %v3021_v39 = vld [vmem:[%s3866_s1 + $0x268] sm:$0xff]  }
  0x18   :  { %2641 = vmatpush3.bf16.msra.mxu0 %v2958_v22  ;;  %v3000_v19 = vld [vmem:[%s3866_s1 + $0x1b8] sm:$0xff]   ;;  %v459_v22 = vcombine.high %v443_v17, %v443_v17  ;;  %v3017_v35 = vld [vmem:[%s3866_s1 + $0x260] sm:$0xff]   ;;  %v3023_v42 = vld [vmem:[%s3866_s1 + $0x2e8] sm:$0xff]  }
  0x19   :  { %2663 = vmatpush3.bf16.msra.mxu1 %v2959_v23  ;;  %2642 = vmatprep.subr.bf16.mxu0 %v2960_v24  ;;  %v3005_v23 = vld [vmem:[%s3866_s1 + $0x248] sm:$0xff]   ;;  %v3004_v24 = vld [vmem:[%s3866_s1 + $0x280] sm:$0xff]   ;;  %v3015_v33 = vld [vmem:[%s3866_s1 + $0x2d8] sm:$0xff]  }
  0x1a   :  { %2664 = vmatprep.subr.bf16.mxu1 %v2961_v25  ;;  %v3007_v25 = vld [vmem:[%s3866_s1 + $0x2c8] sm:$0xff]   ;;  %v3016_v36 = vld [vmem:[%s3866_s1 + $0x298] sm:$0xff]   ;;  %v3019_v37 = vld [vmem:[%s3866_s1 + $0x2e0] sm:$0xff]  }
  0x1b   :  { %v3018_v38 = vld [vmem:[%s3866_s1 + $0x220] sm:$0xff]   ;;  %v3022_v43 = vld [vmem:[%s3866_s1 + $0x228] sm:$0xff]   ;;  %v3026_v52 = vld [vmem:[%s3866_s1 + $0x230] sm:$0xff]  }
  0x1c   :  { %2643 = vmatpush3.bf16.msra.mxu0 %v2962_v26  ;;  %v3006_v26 = vld [vmem:[%s3866_s1 + $0x208] sm:$0xff]  }
  0x1d   :  { %2665 = vmatpush3.bf16.msra.mxu1 %v2963_v27  ;;  %2644 = vmatprep.subr.bf16.mxu0 %v2964_v28  ;;  %v3009_v27 = vld [vmem:[%s3866_s1 + $0x250] sm:$0xff]   ;;  %v3008_v28 = vld [vmem:[%s3866_s1 + $0x288] sm:$0xff]  }
  0x1e   :  { %2666 = vmatprep.subr.bf16.mxu1 %v2965_v30  ;;  %v3010_v30 = vld [vmem:[%s3866_s1 + $0x210] sm:$0xff]   ;;  %v24_v44 = vld [vmem:[%s3865_s0 + $0x8] sm:$0xff] }
  0x1f   :  { %v469_v46 = vrot.slane %v24_v44, %v3308_v41  ;;  %v462_v47 = vcombine.high %v24_v44, %v24_v44  ;;  %v3073_v44 = vld [vmem:[%s3866_s1 + $0x488] sm:$0xff]  }
  0x20   :  { %2645 = vmatpush3.bf16.msra.mxu0 %v2966_v31  ;;  %v3013_v31 = vld [vmem:[%s3866_s1 + $0x258] sm:$0xff]  }
  0x21   :  { %2667 = vmatpush3.bf16.msra.mxu1 %v2967_v32  ;;  %2674 = vmatprep.subr.bf16.mxu0 %v2969_v34  ;;  %v3012_v32 = vld [vmem:[%s3866_s1 + $0x290] sm:$0xff]   ;;  %v3014_v34 = vld [vmem:[%s3866_s1 + $0x218] sm:$0xff]  }
  0x22   :  { %2696 = vmatprep.subr.bf16.mxu1 %v2971_v40  ;;  %v3020_v40 = vld [vmem:[%s3866_s1 + $0x2a0] sm:$0xff]  }
  0x23   :  { %1769 = vmatmul.mubr.bf16.vlgmr.msra.gmra.mrb[0].mxu0 %v436_v45  ;;  %v3025_v45 = vld [vmem:[%s3866_s1 + $0x270] sm:$0xff]  }
  0x24   :  { %2675 = vmatpush3.bf16.msra.mxu0 %v2970_v48  ;;  %1809 = vmatmul.mubr.bf16.vlgmr.msra.gmra.mrb[0].mxu1 %v458_v50  ;;  %v3024_v48 = vld [vmem:[%s3866_s1 + $0x2a8] sm:$0xff]   ;;  %v477_v50 = vcombine.high %v469_v46, %v469_v46 }
  0x25   :  { %2676 = vmatprep.subr.bf16.mxu0 %v2973_v51  ;;  %2697 = vmatpush3.bf16.msra.mxu1 %v2972_v53  ;;  %v3494_v51 = vrot.slane %v462_v47, %v3308_v41  ;;  %v3029_v53 = vld [vmem:[%s3866_s1 + $0x278] sm:$0xff]  }
  0x26   :  { %1848 = vmatprep.mubr.bf16.mxu0 %v457_v49  ;;  %2698 = vmatprep.subr.bf16.mxu1 %v2975_v54  ;;  %v3027_v49 = vld [vmem:[%s3866_s1 + $0x2f0] sm:$0xff]   ;;  %v499_v54 = vrot.slane %v477_v50, %v3308_v41  ;;  %v3078_v47 = vld [vmem:[%s3866_s1 + $0x458] sm:$0xff]  }
  0x27   :  { %1888 = vmatprep.mubr.bf16.mxu1 %v461_v55  ;;  %v3028_v55 = vld [vmem:[%s3866_s1 + $0x2b0] sm:$0xff]   ;;  %v3079_v50 = vld [vmem:[%s3866_s1 + $0x418] sm:$0xff]  }
  0x28   :  { %2677 = vmatpush3.bf16.msra.mxu0 %v2974_v56  ;;  %v478_v56 = vcombine.high %v3494_v51, %v3494_v51 }
  0x29   :  { %2678 = vmatprep.subr.bf16.mxu0 %v2977_v57  ;;  %2699 = vmatpush3.bf16.msra.mxu1 %v2976_v58  ;;  %v3031_v57 = vld [vmem:[%s3866_s1 + $0x2f8] sm:$0xff]   ;;  %v509_v58 = vcombine.high %v499_v54, %v499_v54 }
  0x2a   :  { %2700 = vmatprep.subr.bf16.mxu1 %v2979_v59  ;;  %v3030_v59 = vld [vmem:[%s3866_s1 + $0x238] sm:$0xff]  }
  0x2c   :  { %2679 = vmatpush3.bf16.msra.mxu0 %v2978_v60  ;;  %v485_v60 = vrot.slane %v469_v46, %v3308_v41  ;;  %v3075_v46 = vld [vmem:[%s3866_s1 + $0x410] sm:$0xff]  }
  0x2d   :  { %2680 = vmatprep.subr.bf16.mxu0 %v2981_v61  ;;  %2701 = vmatpush3.bf16.msra.mxu1 %v2980_v62  ;;  %v3033_v61 = vld [vmem:[%s3866_s1 + $0x340] sm:$0xff]   ;;  %v3032_v62 = vld [vmem:[%s3866_s1 + $0x2b8] sm:$0xff]  }
  0x2e   :  { %2702 = vmatprep.subr.bf16.mxu1 %v2983_v63  ;;  %v506_v63 = vrot.slane %v478_v56, %v3308_v41  ;;  %v3085_v56 = vld [vmem:[%s3866_s1 + $0x4a0] sm:$0xff]  }
  0x30   :  { %2681 = vmatpush3.bf16.msra.mxu0 %v2982_v0  ;;  %v3035_v0 = vld [vmem:[%s3866_s1 + $0x3c0] sm:$0xff]  }
  0x31   :  { %2682 = vmatprep.subr.bf16.mxu0 %v2985_v1  ;;  %2703 = vmatpush3.bf16.msra.mxu1 %v2984_v2  ;;  %v3034_v1 = vld [vmem:[%s3866_s1 + $0x300] sm:$0xff]   ;;  %v507_v2 = vcombine.high %v485_v60, %v485_v60 }
  0x32   :  { %2704 = vmatprep.subr.bf16.mxu1 %v2987_v3  ;;  %v3037_v3 = vld [vmem:[%s3866_s1 + $0x348] sm:$0xff]  }
  0x34   :  { %2683 = vmatpush3.bf16.msra.mxu0 %v2986_v4  ;;  %v3036_v4 = vld [vmem:[%s3866_s1 + $0x380] sm:$0xff]  }
  0x35   :  { %2684 = vmatprep.subr.bf16.mxu0 %v2989_v5  ;;  %2705 = vmatpush3.bf16.msra.mxu1 %v2988_v6  ;;  %v510_v5 = vcombine.high %v506_v63, %v506_v63  ;;  %v3039_v6 = vld [vmem:[%s3866_s1 + $0x3c8] sm:$0xff]  }
  0x36   :  { %2706 = vmatprep.subr.bf16.mxu1 %v2991_v7  ;;  %v3038_v7 = vld [vmem:[%s3866_s1 + $0x308] sm:$0xff]  }
  0x38   :  { %2685 = vmatpush3.bf16.msra.mxu0 %v2990_v8  ;;  %v3041_v8 = vld [vmem:[%s3866_s1 + $0x350] sm:$0xff]  }
  0x39   :  { %2686 = vmatprep.subr.bf16.mxu0 %v2993_v9  ;;  %2707 = vmatpush3.bf16.msra.mxu1 %v2992_v10  ;;  %v3040_v9 = vld [vmem:[%s3866_s1 + $0x388] sm:$0xff]   ;;  %v3043_v10 = vld [vmem:[%s3866_s1 + $0x3d0] sm:$0xff]  }
  0x3a   :  { %2708 = vmatprep.subr.bf16.mxu1 %v2995_v11  ;;  %v3042_v11 = vld [vmem:[%s3866_s1 + $0x310] sm:$0xff]  }
  0x3c   :  { %2687 = vmatpush3.bf16.msra.mxu0 %v2994_v12  ;;  %v3045_v12 = vld [vmem:[%s3866_s1 + $0x358] sm:$0xff]  }
  0x3d   :  { %2688 = vmatprep.subr.bf16.mxu0 %v2997_v13  ;;  %2709 = vmatpush3.bf16.msra.mxu1 %v2996_v14  ;;  %v3044_v13 = vld [vmem:[%s3866_s1 + $0x390] sm:$0xff]   ;;  %v3047_v14 = vld [vmem:[%s3866_s1 + $0x3d8] sm:$0xff]  }
  0x3e   :  { %2710 = vmatprep.subr.bf16.mxu1 %v2999_v15  ;;  %v3046_v15 = vld [vmem:[%s3866_s1 + $0x318] sm:$0xff]  }
  0x40   :  { %2689 = vmatpush3.bf16.msra.mxu0 %v2998_v16  ;;  %v3049_v16 = vld [vmem:[%s3866_s1 + $0x360] sm:$0xff]  }
  0x41   :  { %2718 = vmatprep.subr.bf16.mxu0 %v3001_v18  ;;  %2711 = vmatpush3.bf16.msra.mxu1 %v3000_v19  ;;  %v3051_v18 = vld [vmem:[%s3866_s1 + $0x3e0] sm:$0xff]  }
  0x42   :  { %2740 = vmatprep.subr.bf16.mxu1 %v3003_v20  ;;  %v3050_v19 = vld [vmem:[%s3866_s1 + $0x320] sm:$0xff]   ;;  %v3053_v20 = vld [vmem:[%s3866_s1 + $0x368] sm:$0xff]  }
  0x43   :  { %1849 = vmatmul.mubr.bf16.vlgmr.msra.gmra.mrb[4].mxu0 %v443_v17  ;;  %v3048_v17 = vld [vmem:[%s3866_s1 + $0x398] sm:$0xff]  }
  0x44   :  { %2719 = vmatpush3.bf16.msra.mxu0 %v3002_v21  ;;  %1889 = vmatmul.mubr.bf16.vlgmr.msra.gmra.mrb[4].mxu1 %v459_v22  ;;  %v3052_v21 = vld [vmem:[%s3866_s1 + $0x3a0] sm:$0xff]   ;;  %v3055_v22 = vld [vmem:[%s3866_s1 + $0x3e8] sm:$0xff]  }
  0x45   :  { %2720 = vmatprep.subr.bf16.mxu0 %v3005_v23  ;;  %2741 = vmatpush3.bf16.msra.mxu1 %v3004_v24  ;;  %v3054_v23 = vld [vmem:[%s3866_s1 + $0x328] sm:$0xff]   ;;  %v3057_v24 = vld [vmem:[%s3866_s1 + $0x370] sm:$0xff]  }
  0x46   :  { %2742 = vmatprep.subr.bf16.mxu1 %v3007_v25  ;;  %1928 = vmatprep.mubr.bf16.mxu0 %v499_v54  ;;  %v3056_v25 = vld [vmem:[%s3866_s1 + $0x3a8] sm:$0xff]   ;;  %v3083_v54 = vld [vmem:[%s3866_s1 + $0x420] sm:$0xff]  }
  0x47   :  { %1968 = vmatprep.mubr.bf16.mxu1 %v509_v58  ;;  %v3087_v58 = vld [vmem:[%s3866_s1 + $0x428] sm:$0xff]  }
  0x48   :  { %2721 = vmatpush3.bf16.msra.mxu0 %v3006_v26  ;;  %v3059_v26 = vld [vmem:[%s3866_s1 + $0x3f0] sm:$0xff]  }
  0x49   :  { %2722 = vmatprep.subr.bf16.mxu0 %v3009_v27  ;;  %2743 = vmatpush3.bf16.msra.mxu1 %v3008_v28  ;;  %v3058_v27 = vld [vmem:[%s3866_s1 + $0x330] sm:$0xff]   ;;  %v3061_v28 = vld [vmem:[%s3866_s1 + $0x378] sm:$0xff]  }
  0x4a   :  { %2744 = vmatprep.subr.bf16.mxu1 %v3011_v29  ;;  %v3060_v29 = vld [vmem:[%s3866_s1 + $0x3b0] sm:$0xff]  }
  0x4c   :  { %2723 = vmatpush3.bf16.msra.mxu0 %v3010_v30  ;;  %v3063_v30 = vld [vmem:[%s3866_s1 + $0x3f8] sm:$0xff]  }
  0x4d   :  { %2724 = vmatprep.subr.bf16.mxu0 %v3013_v31  ;;  %2745 = vmatpush3.bf16.msra.mxu1 %v3012_v32  ;;  %v3062_v31 = vld [vmem:[%s3866_s1 + $0x338] sm:$0xff]   ;;  %v492_v32 = vrot.slane %v3494_v51, %v3308_v41  ;;  %v3082_v51 = vld [vmem:[%s3866_s1 + $0x460] sm:$0xff]  }
  0x4e   :  { %2746 = vmatprep.subr.bf16.mxu1 %v3015_v33  ;;  %v3066_v33 = vld [vmem:[%s3866_s1 + $0x440] sm:$0xff]  }
  0x50   :  { %2725 = vmatpush3.bf16.msra.mxu0 %v3014_v34  ;;  %v3065_v34 = vld [vmem:[%s3866_s1 + $0x3b8] sm:$0xff]  }
  0x51   :  { %2726 = vmatprep.subr.bf16.mxu0 %v3017_v35  ;;  %2747 = vmatpush3.bf16.msra.mxu1 %v3016_v36  ;;  %v3068_v35 = vld [vmem:[%s3866_s1 + $0x4c0] sm:$0xff]  }
  0x52   :  { %2748 = vmatprep.subr.bf16.mxu1 %v3019_v37  ;;  %v3067_v36 = vld [vmem:[%s3866_s1 + $0x400] sm:$0xff]   ;;  %v508_v37 = vcombine.high %v492_v32, %v492_v32 }
  0x54   :  { %2727 = vmatpush3.bf16.msra.mxu0 %v3018_v38  ;;  %v3070_v38 = vld [vmem:[%s3866_s1 + $0x448] sm:$0xff]  }
  0x55   :  { %2728 = vmatprep.subr.bf16.mxu0 %v3021_v39  ;;  %2749 = vmatpush3.bf16.msra.mxu1 %v3020_v40  ;;  %v3069_v39 = vld [vmem:[%s3866_s1 + $0x480] sm:$0xff]   ;;  %v3072_v40 = vld [vmem:[%s3866_s1 + $0x4c8] sm:$0xff]  }
  0x56   :  { %2750 = vmatprep.subr.bf16.mxu1 %v3023_v42  ;;  %v3071_v42 = vld [vmem:[%s3866_s1 + $0x408] sm:$0xff]  }
  0x58   :  { %2729 = vmatpush3.bf16.msra.mxu0 %v3022_v43  ;;  %v3074_v43 = vld [vmem:[%s3866_s1 + $0x450] sm:$0xff]  }
  0x59   :  { %2730 = vmatprep.subr.bf16.mxu0 %v3025_v45  ;;  %2751 = vmatpush3.bf16.msra.mxu1 %v3024_v48  ;;  %v3076_v45 = vld [vmem:[%s3866_s1 + $0x4d0] sm:$0xff]  }
  0x5a   :  { %2752 = vmatprep.subr.bf16.mxu1 %v3027_v49  ;;  %v3077_v48 = vld [vmem:[%s3866_s1 + $0x490] sm:$0xff]   ;;  %v3080_v49 = vld [vmem:[%s3866_s1 + $0x4d8] sm:$0xff]  }
  0x5c   :  { %2731 = vmatpush3.bf16.msra.mxu0 %v3026_v52  ;;  %v3081_v52 = vld [vmem:[%s3866_s1 + $0x498] sm:$0xff]  }
  0x5d   :  { %2732 = vmatprep.subr.bf16.mxu0 %v3029_v53  ;;  %2753 = vmatpush3.bf16.msra.mxu1 %v3028_v55  ;;  %v3084_v53 = vld [vmem:[%s3866_s1 + $0x4e0] sm:$0xff]   ;;  %v3086_v55 = vld [vmem:[%s3866_s1 + $0x468] sm:$0xff]  }
  0x5e   :  { %2754 = vmatprep.subr.bf16.mxu1 %v3031_v57  ;;  %v3088_v57 = vld [vmem:[%s3866_s1 + $0x4e8] sm:$0xff]  }
  0x60   :  { %2733 = vmatpush3.bf16.msra.mxu0 %v3030_v59  ;;  %v25_v59 = vld [vmem:[%s3865_s0 + $0x10] sm:$0xff] }
  0x61   :  { %2762 = vmatprep.subr.bf16.mxu0 %v3033_v61  ;;  %2755 = vmatpush3.bf16.msra.mxu1 %v3032_v62  ;;  %v518_v61 = vrot.slane %v25_v59, %v3308_v41  ;;  %v511_v62 = vcombine.high %v25_v59, %v25_v59 }
  0x62   :  { %2784 = vmatprep.subr.bf16.mxu1 %v3035_v0  ;;  %v3092_v0 = vld [vmem:[%s3866_s1 + $0x4f0] sm:$0xff]  }
  0x63   :  { %1929 = vmatmul.mubr.bf16.vlgmr.msra.gmra.mrb[8].mxu0 %v485_v60  ;;  %v3090_v60 = vld [vmem:[%s3866_s1 + $0x470] sm:$0xff]  }
  0x64   :  { %2763 = vmatpush3.bf16.msra.mxu0 %v3034_v1  ;;  %2008 = vmatprep.mubr.bf16.mxu0 %v506_v63  ;;  %v3089_v63 = vld [vmem:[%s3866_s1 + $0x4a8] sm:$0xff]   ;;  %v526_v1 = vcombine.high %v518_v61, %v518_v61 }
  0x65   :  { %1969 = vmatmul.mubr.bf16.vlgmr.msra.gmra.mrb[8].mxu1 %v507_v2  ;;  %2764 = vmatprep.subr.bf16.mxu0 %v3037_v3  ;;  %v3700_v2 = vrot.slane %v511_v62, %v3308_v41  ;;  %v3091_v3 = vld [vmem:[%s3866_s1 + $0x430] sm:$0xff]  }
  0x66   :  { %2785 = vmatpush3.bf16.msra.mxu1 %v3036_v4  ;;  %2048 = vmatprep.mubr.bf16.mxu1 %v510_v5  ;;  %v3094_v4 = vld [vmem:[%s3866_s1 + $0x478] sm:$0xff]   ;;  %v548_v5 = vrot.slane %v526_v1, %v3308_v41 }
  0x67   :  { %2786 = vmatprep.subr.bf16.mxu1 %v3039_v6  ;;  %v3093_v6 = vld [vmem:[%s3866_s1 + $0x4b0] sm:$0xff]  }
  0x68   :  { %2765 = vmatpush3.bf16.msra.mxu0 %v3038_v7  ;;  %v527_v7 = vcombine.high %v3700_v2, %v3700_v2 }
  0x69   :  { %2766 = vmatprep.subr.bf16.mxu0 %v3041_v8  ;;  %v3096_v8 = vld [vmem:[%s3866_s1 + $0x4f8] sm:$0xff]  }
  0x6a   :  { %2787 = vmatpush3.bf16.msra.mxu1 %v3040_v9  ;;  %v558_v9 = vcombine.high %v548_v5, %v548_v5 }
  0x6b   :  { %2788 = vmatprep.subr.bf16.mxu1 %v3043_v10  ;;  %v3095_v10 = vld [vmem:[%s3866_s1 + $0x438] sm:$0xff]  }
  0x6c   :  { %2767 = vmatpush3.bf16.msra.mxu0 %v3042_v11  ;;  %v534_v11 = vrot.slane %v518_v61, %v3308_v41 }
  0x6d   :  { %2768 = vmatprep.subr.bf16.mxu0 %v3045_v12  ;;  %v3098_v12 = vld [vmem:[%s3866_s1 + $0x540] sm:$0xff]  }
  0x6e   :  { %2789 = vmatpush3.bf16.msra.mxu1 %v3044_v13  ;;  %v3097_v13 = vld [vmem:[%s3866_s1 + $0x4b8] sm:$0xff]  }
  0x6f   :  { %2790 = vmatprep.subr.bf16.mxu1 %v3047_v14  ;;  %v555_v14 = vrot.slane %v527_v7, %v3308_v41 }
  0x70   :  { %2769 = vmatpush3.bf16.msra.mxu0 %v3046_v15  ;;  %v3100_v15 = vld [vmem:[%s3866_s1 + $0x5c0] sm:$0xff]  }
  0x71   :  { %2770 = vmatprep.subr.bf16.mxu0 %v3049_v16  ;;  %v3099_v16 = vld [vmem:[%s3866_s1 + $0x500] sm:$0xff]  }
  0x72   :  { %2791 = vmatpush3.bf16.msra.mxu1 %v3048_v17  ;;  %v556_v17 = vcombine.high %v534_v11, %v534_v11 }
  0x73   :  { %2792 = vmatprep.subr.bf16.mxu1 %v3051_v18  ;;  %v3102_v18 = vld [vmem:[%s3866_s1 + $0x548] sm:$0xff]  }
  0x74   :  { %2771 = vmatpush3.bf16.msra.mxu0 %v3050_v19  ;;  %v3101_v19 = vld [vmem:[%s3866_s1 + $0x580] sm:$0xff]  }
  0x75   :  { %2772 = vmatprep.subr.bf16.mxu0 %v3053_v20  ;;  %v559_v20 = vcombine.high %v555_v14, %v555_v14 }
  0x76   :  { %2793 = vmatpush3.bf16.msra.mxu1 %v3052_v21  ;;  %v3104_v21 = vld [vmem:[%s3866_s1 + $0x5c8] sm:$0xff]  }
  0x77   :  { %2794 = vmatprep.subr.bf16.mxu1 %v3055_v22  ;;  %v3103_v22 = vld [vmem:[%s3866_s1 + $0x508] sm:$0xff]  }
  0x78   :  { %2773 = vmatpush3.bf16.msra.mxu0 %v3054_v23  ;;  %v3106_v23 = vld [vmem:[%s3866_s1 + $0x550] sm:$0xff]  }
  0x79   :  { %2774 = vmatprep.subr.bf16.mxu0 %v3057_v24  ;;  %v3105_v24 = vld [vmem:[%s3866_s1 + $0x588] sm:$0xff]  }
  0x7a   :  { %2795 = vmatpush3.bf16.msra.mxu1 %v3056_v25  ;;  %v3108_v25 = vld [vmem:[%s3866_s1 + $0x5d0] sm:$0xff]  }
  0x7b   :  { %2796 = vmatprep.subr.bf16.mxu1 %v3059_v26  ;;  %v3107_v26 = vld [vmem:[%s3866_s1 + $0x510] sm:$0xff]  }
  0x7c   :  { %2775 = vmatpush3.bf16.msra.mxu0 %v3058_v27  ;;  %v3110_v27 = vld [vmem:[%s3866_s1 + $0x558] sm:$0xff]  }
  0x7d   :  { %2776 = vmatprep.subr.bf16.mxu0 %v3061_v28  ;;  %v3109_v28 = vld [vmem:[%s3866_s1 + $0x590] sm:$0xff]  }
  0x7e   :  { %2797 = vmatpush3.bf16.msra.mxu1 %v3060_v29  ;;  %v3112_v29 = vld [vmem:[%s3866_s1 + $0x5d8] sm:$0xff]  }
  0x7f   :  { %2798 = vmatprep.subr.bf16.mxu1 %v3063_v30  ;;  %v3111_v30 = vld [vmem:[%s3866_s1 + $0x518] sm:$0xff]  }
  0x80   :  { %2777 = vmatpush3.bf16.msra.mxu0 %v3062_v31  ;;  %v3114_v31 = vld [vmem:[%s3866_s1 + $0x560] sm:$0xff]  }
  0x81   :  { %2806 = vmatprep.subr.bf16.mxu0 %v3066_v33  ;;  %v3116_v33 = vld [vmem:[%s3866_s1 + $0x5e0] sm:$0xff]  }
  0x82   :  { %2799 = vmatpush3.bf16.msra.mxu1 %v3065_v34  ;;  %v3115_v34 = vld [vmem:[%s3866_s1 + $0x520] sm:$0xff]  }
  0x83   :  { %2009 = vmatmul.mubr.bf16.vlgmr.msra.gmra.mrb[12].mxu0 %v492_v32  ;;  %2828 = vmatprep.subr.bf16.mxu1 %v3068_v35  ;;  %v3113_v32 = vld [vmem:[%s3866_s1 + $0x598] sm:$0xff]   ;;  %v3118_v35 = vld [vmem:[%s3866_s1 + $0x568] sm:$0xff]  }
  0x84   :  { %2807 = vmatpush3.bf16.msra.mxu0 %v3067_v36  ;;  %2088 = vmatprep.mubr.bf16.mxu0 %v548_v5  ;;  %v3117_v36 = vld [vmem:[%s3866_s1 + $0x5a0] sm:$0xff]  }
  0x85   :  { %2049 = vmatmul.mubr.bf16.vlgmr.msra.gmra.mrb[12].mxu1 %v508_v37  ;;  %2808 = vmatprep.subr.bf16.mxu0 %v3070_v38  ;;  %v3120_v37 = vld [vmem:[%s3866_s1 + $0x5e8] sm:$0xff]  }
  0x86   :  { %2829 = vmatpush3.bf16.msra.mxu1 %v3069_v39  ;;  %2128 = vmatprep.mubr.bf16.mxu1 %v558_v9  ;;  %v3119_v38 = vld [vmem:[%s3866_s1 + $0x528] sm:$0xff]   ;;  %v3122_v39 = vld [vmem:[%s3866_s1 + $0x570] sm:$0xff]  }
  0x87   :  { %2830 = vmatprep.subr.bf16.mxu1 %v3072_v40  ;;  %v3121_v40 = vld [vmem:[%s3866_s1 + $0x5a8] sm:$0xff]  }
  0x88   :  { %2809 = vmatpush3.bf16.msra.mxu0 %v3071_v42  ;;  %v3124_v42 = vld [vmem:[%s3866_s1 + $0x5f0] sm:$0xff]  }
  0x89   :  { %2810 = vmatprep.subr.bf16.mxu0 %v3074_v43  ;;  %v3123_v43 = vld [vmem:[%s3866_s1 + $0x530] sm:$0xff]  }
  0x8a   :  { %2831 = vmatpush3.bf16.msra.mxu1 %v3073_v44  ;;  %v3126_v44 = vld [vmem:[%s3866_s1 + $0x578] sm:$0xff]  }
  0x8b   :  { %2832 = vmatprep.subr.bf16.mxu1 %v3076_v45  ;;  %v3125_v45 = vld [vmem:[%s3866_s1 + $0x5b0] sm:$0xff]  }
  0x8c   :  { %2811 = vmatpush3.bf16.msra.mxu0 %v3075_v46  ;;  %v3128_v46 = vld [vmem:[%s3866_s1 + $0x5f8] sm:$0xff]  }
  0x8d   :  { %2812 = vmatprep.subr.bf16.mxu0 %v3078_v47  ;;  %v3127_v47 = vld [vmem:[%s3866_s1 + $0x538] sm:$0xff]  }
  0x8e   :  { %2833 = vmatpush3.bf16.msra.mxu1 %v3077_v48  ;;  %v541_v48 = vrot.slane %v3700_v2, %v3308_v41 }
  0x8f   :  { %2834 = vmatprep.subr.bf16.mxu1 %v3080_v49  ;;  %v3130_v49 = vld [vmem:[%s3866_s1 + $0x5b8] sm:$0xff]  }
  0x90   :  { %2813 = vmatpush3.bf16.msra.mxu0 %v3079_v50 }
  0x91   :  { %2814 = vmatprep.subr.bf16.mxu0 %v3082_v51 }
  0x92   :  { %2835 = vmatpush3.bf16.msra.mxu1 %v3081_v52 }
  0x93   :  { %2836 = vmatprep.subr.bf16.mxu1 %v3084_v53 }
  0x94   :  { %2815 = vmatpush3.bf16.msra.mxu0 %v3083_v54 }
  0x95   :  { %2816 = vmatprep.subr.bf16.mxu0 %v3086_v55 }
  0x96   :  { %2837 = vmatpush3.bf16.msra.mxu1 %v3085_v56 }
  0x97   :  { %2838 = vmatprep.subr.bf16.mxu1 %v3088_v57 }
  0x98   :  { %2817 = vmatpush3.bf16.msra.mxu0 %v3087_v58 }
  0x99   :  { %2818 = vmatprep.subr.bf16.mxu0 %v3090_v60 }
  0x9a   :  { %2839 = vmatpush3.bf16.msra.mxu1 %v3089_v63 }
  0x9b   :  { %2840 = vmatprep.subr.bf16.mxu1 %v3092_v0 }
  0x9c   :  { %2819 = vmatpush3.bf16.msra.mxu0 %v3091_v3 }
  0x9d   :  { %2820 = vmatprep.subr.bf16.mxu0 %v3094_v4 }
  0x9e   :  { %2841 = vmatpush3.bf16.msra.mxu1 %v3093_v6 }
  0x9f   :  { %2842 = vmatprep.subr.bf16.mxu1 %v3096_v8 }
  0xa0   :  { %2821 = vmatpush3.bf16.msra.mxu0 %v3095_v10 }
  0xa1   :  { %2850 = vmatprep.subr.bf16.mxu0 %v3098_v12 }
  0xa2   :  { %2843 = vmatpush3.bf16.msra.mxu1 %v3097_v13 }
  0xa3   :  { %2089 = vmatmul.mubr.bf16.vlgmr.msra.gmra.mrb[16].mxu0 %v534_v11  ;;  %2872 = vmatprep.subr.bf16.mxu1 %v3100_v15 }
  0xa4   :  { %2851 = vmatpush3.bf16.msra.mxu0 %v3099_v16  ;;  %2168 = vmatprep.mubr.bf16.mxu0 %v555_v14 }
  0xa5   :  { %2129 = vmatmul.mubr.bf16.vlgmr.msra.gmra.mrb[16].mxu1 %v556_v17  ;;  %2852 = vmatprep.subr.bf16.mxu0 %v3102_v18 }
  0xa6   :  { %2873 = vmatpush3.bf16.msra.mxu1 %v3101_v19  ;;  %2208 = vmatprep.mubr.bf16.mxu1 %v559_v20 }
  0xa7   :  { %2874 = vmatprep.subr.bf16.mxu1 %v3104_v21 }
  0xa8   :  { %2853 = vmatpush3.bf16.msra.mxu0 %v3103_v22 }
  0xa9   :  { %2854 = vmatprep.subr.bf16.mxu0 %v3106_v23 }
  0xaa   :  { %2875 = vmatpush3.bf16.msra.mxu1 %v3105_v24 }
  0xab   :  { %2876 = vmatprep.subr.bf16.mxu1 %v3108_v25 }
  0xac   :  { %2855 = vmatpush3.bf16.msra.mxu0 %v3107_v26 }
  0xad   :  { %2856 = vmatprep.subr.bf16.mxu0 %v3110_v27 }
  0xae   :  { %2877 = vmatpush3.bf16.msra.mxu1 %v3109_v28 }
  0xaf   :  { %2878 = vmatprep.subr.bf16.mxu1 %v3112_v29 }
  0xb0   :  { %2857 = vmatpush3.bf16.msra.mxu0 %v3111_v30 }
  0xb1   :  { %2858 = vmatprep.subr.bf16.mxu0 %v3114_v31 }
  0xb2   :  { %2879 = vmatpush3.bf16.msra.mxu1 %v3113_v32 }
  0xb3   :  { %2880 = vmatprep.subr.bf16.mxu1 %v3116_v33 }
  0xb4   :  { %2859 = vmatpush3.bf16.msra.mxu0 %v3115_v34 }
  0xb5   :  { %2860 = vmatprep.subr.bf16.mxu0 %v3118_v35 }
  0xb6   :  { %2881 = vmatpush3.bf16.msra.mxu1 %v3117_v36 }
  0xb7   :  { %2882 = vmatprep.subr.bf16.mxu1 %v3120_v37 }
  0xb8   :  { %2861 = vmatpush3.bf16.msra.mxu0 %v3119_v38 }
  0xb9   :  { %2862 = vmatprep.subr.bf16.mxu0 %v3122_v39 }
  0xba   :  { %2883 = vmatpush3.bf16.msra.mxu1 %v3121_v40 }
  0xbb   :  { %2884 = vmatprep.subr.bf16.mxu1 %v3124_v42 }
  0xbc   :  { %2863 = vmatpush3.bf16.msra.mxu0 %v3123_v43 }
  0xbd   :  { %2864 = vmatprep.subr.bf16.mxu0 %v3126_v44 }
  0xbe   :  { %2885 = vmatpush3.bf16.msra.mxu1 %v3125_v45 }
  0xbf   :  { %11 = vsyncpa [#allocation4], 0  ;;  %2886 = vmatprep.subr.bf16.mxu1 %v3128_v46  ;;  %v3131_v50 = vld [vmem:[%s3868_s3] sm:$0xff]   ;;  %v3170_v51 = vmov 0.0   ;;  %v557_v52 = vcombine.high %v541_v48, %v541_v48  ;;  %v3132_v41 = vld [vmem:[%s3868_s3 + $0x8] sm:$0xff]   ;;  %vm3171_vm0 = vmmov 0  }
  0xc0   :  { %2865 = vmatpush3.bf16.msra.mxu0 %v3127_v47  ;;  %v3133_v53 = vld [vmem:[%s3868_s3 + $0x10] sm:$0xff]   ;;  %v3134_v54 = vld [vmem:[%s3868_s3 + $0x18] sm:$0xff]   ;;  %v3135_v55 = vld [vmem:[%s3868_s3 + $0x20] sm:$0xff]   ;;  %vm2322_vm1 = vcmask 1041408   ;;  %vm2414_vm2 = vcmask 9216  }
  0xc1   :  { %2905 = vmatprep.subr.bf16.mxu0 %v3170_v51  ;;  %v3136_v56 = vld [vmem:[%s3868_s3 + $0x28] sm:$0xff]   ;;  %v3137_v57 = vld [vmem:[%s3868_s3 + $0x30] sm:$0xff]   ;;  %v3138_v58 = vld [vmem:[%s3868_s3 + $0x38] sm:$0xff]  }
  0xc2   :  { %2887 = vmatpush3.bf16.msra.mxu1 %v3130_v49  ;;  %v2216_v59 = vld [vmem:[%s3867_s2] sm:$0x1] }
  0xc3   :  { %2169 = vmatmul.mubr.bf16.vlgmr.msra.gmra.mrb[20].mxu0 %v541_v48  ;;  %2925 = vmatprep.subr.mxu1 %v3170_v51 }
  0xc4   :  { %2906 = vmatpush3.bf16.msra.mxu0 %v3131_v50  ;;  %2921 = vmatprep.mubr.msk.bf16.mxu0 %vm3171_vm0, %v3170_v51 }
  0xc5   :  { %2209 = vmatmul.mubr.bf16.vlgmr.msra.gmra.mrb[20].mxu1 %v557_v52  ;;  %2907 = vmatprep.subr.bf16.mxu0 %v3170_v51 }
  0xc6   :  { %2927 = vmatprep.mubr.msk.f32.mxu1 %vm3171_vm0, %v3170_v51 }
  0xc8   :  { %2908 = vmatpush3.bf16.msra.mxu0 %v3132_v41 }
  0xc9   :  { %2909 = vmatprep.subr.bf16.mxu0 %v3170_v51 }
  0xcc   :  { %2910 = vmatpush3.bf16.msra.mxu0 %v3133_v53 }
  0xcd   :  { %2911 = vmatprep.subr.bf16.mxu0 %v3170_v51 }
  0xd0   :  { %2912 = vmatpush3.bf16.msra.mxu0 %v3134_v54 }
  0xd1   :  { %2913 = vmatprep.subr.bf16.mxu0 %v3170_v51 }
  0xd4   :  { %2914 = vmatpush3.bf16.msra.mxu0 %v3135_v55 }
  0xd5   :  { %2915 = vmatprep.subr.bf16.mxu0 %v3170_v51 }
  0xd8   :  { %2916 = vmatpush3.bf16.msra.mxu0 %v3136_v56 }
  0xd9   :  { %2917 = vmatprep.subr.bf16.mxu0 %v3170_v51 }
  0xdc   :  { %2918 = vmatpush3.bf16.msra.mxu0 %v3137_v57 }
  0xdd   :  { %2919 = vmatprep.subr.bf16.mxu0 %v3170_v51 }
  0xe0   :  { %2920 = vmatpush3.bf16.msra.mxu0 %v3138_v58 }
  0xe3   :  { %2922 = vmatmul.mubr.bf16.vlgmr.msra.gmra.mrb[24].mxu0 %v2216_v59 }
  0xf6   :  { %v2646_v60 = vpop.f32.mrb[0].mxu0 }
  0xf7   :  { %v2647_v61 = vpop.f32.mrb[1].mxu0  ;;  %v2668_v62 = vpop.f32.mrb[0].mxu1 }
  0xf8   :  { %v2648_v63 = vadd.f32 %v2647_v61, %v2646_v60  ;;  %v2649_v0 = vpop.f32.mrb[2].mxu0  ;;  %v2669_v1 = vpop.f32.mrb[1].mxu1 }
  0xf9   :  { %v2650_v2 = vpop.f32.mrb[3].mxu0  ;;  %v2670_v3 = vadd.f32 %v2669_v1, %v2668_v62  ;;  %v2671_v4 = vpop.f32.mrb[2].mxu1 }
  0xfa   :  { %v2672_v5 = vpop.f32.mrb[3].mxu1 }
  0xfb   :  { %v1811_v6 = vadd.f32 %v2670_v3, %v2648_v63 }
 0x116   :  { %v2690_v7 = vpop.f32.mrb[4].mxu0 }
 0x117   :  { %v2691_v8 = vpop.f32.mrb[5].mxu0  ;;  %v2712_v11 = vpop.f32.mrb[4].mxu1 }
 0x118   :  { %v2692_v9 = vadd.f32 %v2691_v8, %v2690_v7  ;;  %v2693_v10 = vpop.f32.mrb[6].mxu0  ;;  %v2713_v13 = vpop.f32.mrb[5].mxu1 }
 0x119   :  { %v2694_v12 = vpop.f32.mrb[7].mxu0  ;;  %v2714_v15 = vadd.f32 %v2713_v13, %v2712_v11  ;;  %v2715_v16 = vpop.f32.mrb[6].mxu1  ;;  %v2335_v11 = vstv %s3869_s4  ;;  %s3172_s4 = smov [#allocation3]  }
 0x11a   :  { %v1851_v14 = vadd.f32 %v2692_v9, %v1811_v6  ;;  %v2716_v17 = vpop.f32.mrb[7].mxu1  ;;  %v2336_v12 = vmul.f32 1.442695, %v2335_v11  ;;  %s2422_s22 = sshll.u32 %s3172_s4, 4  ;;  %s2423_s22 = int_to_ptr.vmem [resolvable:$true] %s2422_s22 }
 0x11b   :  { %s3145_s23 = scalar_lea.vmem %s2423_s22, 32  ;;  %p3150_p1 = scmp.lt.s32.totalorder %s2423_s22, %s2423_s22 }
 0x11c   :  { %v1891_v18 = vadd.f32 %v2714_v15, %v1851_v14  ;;  %3139 = vpow2.f32 %v2336_v12  ;;  %p3146_p0 = scmp.ne.s32.totalorder %s2423_s22, %s3145_s23  ;;  %p3151_p2 = scmp.lt.s32.totalorder %s3145_s23, %s3145_s23 }
 0x11e   :  { %p3152_p3 = por %p3151_p2, %p3150_p1 }
 0x120   :  { %p3153_p4 = pnand %p3152_p3, %p3146_p0 }
 0x126   :  { %v3140_v13 = vpop.eup %3139 }
 0x127   :  { %2930 = vpush %v3140_v13 }
 0x136   :  { %v2734_v19 = vpop.f32.mrb[8].mxu0 }
 0x137   :  { %v2735_v20 = vpop.f32.mrb[9].mxu0 }
 0x138   :  { %v2736_v21 = vadd.f32 %v2735_v20, %v2734_v19  ;;  %v2737_v22 = vpop.f32.mrb[10].mxu0  ;;  %v2756_v23 = vpop.f32.mrb[8].mxu1 }
 0x139   :  { %v2738_v24 = vpop.f32.mrb[11].mxu0  ;;  %v2757_v25 = vpop.f32.mrb[9].mxu1 }
 0x13a   :  { %v1931_v26 = vadd.f32 %v2736_v21, %v1891_v18  ;;  %v2758_v27 = vadd.f32 %v2757_v25, %v2756_v23  ;;  %v2759_v28 = vpop.f32.mrb[10].mxu1 }
 0x13b   :  { %v2760_v29 = vpop.f32.mrb[11].mxu1 }
 0x13c   :  { %v1971_v30 = vadd.f32 %v2758_v27, %v1931_v26 }
 0x156   :  { %v2778_v31 = vpop.f32.mrb[12].mxu0 }
 0x157   :  { %v2779_v32 = vpop.f32.mrb[13].mxu0 }
 0x158   :  { %v2780_v33 = vadd.f32 %v2779_v32, %v2778_v31  ;;  %v2781_v34 = vpop.f32.mrb[14].mxu0  ;;  %v2800_v35 = vpop.f32.mrb[12].mxu1  ;;  %s2931_s21 = spop %2930 }
 0x159   :  { %v2782_v36 = vpop.f32.mrb[15].mxu0  ;;  %v2801_v37 = vpop.f32.mrb[13].mxu1  ;;  %v2409_v20 = vstv %s2931_s21 }
 0x15a   :  { %v2011_v38 = vadd.f32 %v2780_v33, %v1971_v30  ;;  %v2802_v39 = vadd.f32 %v2801_v37, %v2800_v35  ;;  %v2803_v40 = vpop.f32.mrb[14].mxu1 }
 0x15b   :  { %v2804_v42 = vpop.f32.mrb[15].mxu1 }
 0x15c   :  { %v2051_v43 = vadd.f32 %v2802_v39, %v2011_v38 }
 0x176   :  { %v2822_v44 = vpop.f32.mrb[16].mxu0 }
 0x177   :  { %v2823_v45 = vpop.f32.mrb[17].mxu0 }
 0x178   :  { %v2824_v46 = vadd.f32 %v2823_v45, %v2822_v44  ;;  %v2825_v47 = vpop.f32.mrb[18].mxu0  ;;  %v2844_v48 = vpop.f32.mrb[16].mxu1 }
 0x179   :  { %v2826_v49 = vpop.f32.mrb[19].mxu0  ;;  %v2845_v50 = vpop.f32.mrb[17].mxu1 }
 0x17a   :  { %v2091_v51 = vadd.f32 %v2824_v46, %v2051_v43  ;;  %v2846_v52 = vadd.f32 %v2845_v50, %v2844_v48  ;;  %v2847_v41 = vpop.f32.mrb[18].mxu1 }
 0x17b   :  { %v2848_v53 = vpop.f32.mrb[19].mxu1 }
 0x17c   :  { %v2131_v54 = vadd.f32 %v2846_v52, %v2091_v51 }
 0x196   :  { %v2866_v55 = vpop.f32.mrb[20].mxu0 }
 0x197   :  { %v2867_v56 = vpop.f32.mrb[21].mxu0 }
 0x198   :  { %v2868_v57 = vadd.f32 %v2867_v56, %v2866_v55  ;;  %v2869_v58 = vpop.f32.mrb[22].mxu0  ;;  %v2888_v59 = vpop.f32.mrb[20].mxu1 }
 0x199   :  { %v2870_v60 = vpop.f32.mrb[23].mxu0  ;;  %v2889_v61 = vpop.f32.mrb[21].mxu1 }
 0x19a   :  { %v2171_v62 = vadd.f32 %v2868_v57, %v2131_v54  ;;  %v2890_v63 = vadd.f32 %v2889_v61, %v2888_v59  ;;  %v2891_v0 = vpop.f32.mrb[22].mxu1 }
 0x19b   :  { %v2892_v1 = vpop.f32.mrb[23].mxu1 }
 0x19c   :  { %v2211_v2 = vadd.f32 %v2890_v63, %v2171_v62 }
 0x19e   :  { %v2321_v9 = vmul.f32 %v2211_v2, %v2211_v2 }
 0x1a0   :  { %v2323_v10 = vsel %vm2322_vm1, %v2321_v9, 0.0 }
 0x1b6   :  { %v2315_v3 = vpop.f32.mrb[24].mxu0 }
 0x1b7   :  { %v2923_v4 = vpop.f32.mrb[25].mxu0  ;;  %v2328_v5 = vmul.f32 %v2315_v3, %v2315_v3 }
 0x1b8   :  { %v2318_v6 = vpop.f32.mrb[26].mxu0 }
 0x1b9   :  { %v2924_v7 = vpop.f32.mrb[27].mxu0  ;;  %v2329_v8 = vsel %vm2322_vm1, %v2328_v5, 0.0 }
 0x1ba   :  { %2330 = vadd.xlane.f32.xlu0 %v2329_v8 }
 0x1be   :  { %2324 = vadd.xlane.f32.xlu0 %v2323_v10 }
 0x247   :  { %v2331_v14 = vpop.xlane.xlu0 %2330 }
 0x248   :  { %3141 = vrsqrt.f32 %v2331_v14 }
 0x24b   :  { %v2325_v15 = vpop.xlane.xlu0 %2324 }
 0x24c   :  { %3143 = vrsqrt.f32 %v2325_v15 }
 0x252   :  { %v3142_v16 = vpop.eup %3141 }
 0x253   :  { %v2333_v17 = vmul.f32 %v3142_v16, %v2315_v3 }
 0x255   :  { %2926 = vmatpush3.xpose.msra.mxu1 %v2333_v17 }
 0x256   :  { %v3144_v18 = vpop.eup %3143 }
 0x257   :  { %v2327_v19 = vmul.f32 %v3144_v18, %v2211_v2 }
 0x259   :  { %2928 = vmatmul.mubr.f32.vlgmr.msra.gmra.mrb[24].mxu1 %v2327_v19 }
 0x32c   :  { %v2405_v21 = vpop.f32.mrb[24].mxu1 }
 0x32d   :  { %v2410_v22 = vmul.f32 %v2409_v20, %v2405_v21  ;;  %v2929_v23 = vpop.f32.mrb[25].mxu1 }
 0x32f   :  { %v2412_v24 = vmul.f32 0.01, %v2410_v22 }
 0x331   :  { %v2413_v25 = vsub.f32 1.0, %v2412_v24 }
 0x333   :  { %2415 = vst.msk [vmem:[#allocation3] sm:$0x3] %vm2414_vm2, %v2413_v25 }
 0x334   :  { %3156 = shalt.err (!%p3153_p4)
}
 0x335   :  { %s3157_s26 = scalar_lea.hbm %s3870_s5, 32 }
 0x336   :  { %p3158_p5 = scmp.ne.s32.totalorder %s3870_s5, %s3157_s26  ;;  %p3161_p6 = scmp.lt.u32.totalorder %s3157_s26, %s3870_s5 }
 0x338   :  { %p3163_p7 = pnand %p3161_p6, %p3158_p5 }
 0x33a   :  { %3166 = shalt.err (!%p3163_p7)
}
 0x33b   :  { %2425 = dma.vmem_to_hbm [thread:$0]  %s2423_s22, 32, %s3870_s5, [#allocation4]  }
 0x33c   :  { %3167 = dma.done.wait [#allocation4], 32  }
 0x33d   :  { %3168 = vsyncadd [#allocation4], 4294967264 }
 0x33e   :  { %2429 = vsyncpa [#allocation4], 1 }

</bundles_post_ra>
